<compile_context>
chip_gen: v6e
topology: v6e:2x2x1
jax: 0.10.0
libtpu: 0.0.40
codegen_flags: <defaults>
</compile_context>

<pallas_src>
import math
import functools

import jax
import jax.numpy as jnp
from jax import lax
from jax.experimental import pallas as pl
from jax.experimental.pallas import tpu as pltpu


def _round_up(x, m):
    return (x + m - 1) // m * m


def _downsample_matmul_kernel(x_ref, w_ref, b_ref, o_ref):
    """One output tile: o = (x_tile @ w_folded) + bias.

    x_ref: (tm, 9C) bf16   w_ref: (9C, C) bf16   b_ref: (1, C) f32   o_ref: (tm, C) f32
    """
    acc = jnp.dot(x_ref[...], w_ref[...], preferred_element_type=jnp.float32)
    o_ref[...] = (acc + b_ref[...]).astype(o_ref.dtype)


def downsample_pallas(x_nchw, weight_hwio, bias, *, tm=None):
    """Pallas implementation of Downsample.forward.

    x_nchw:      (B, C, H, W) float32
    weight_hwio: (3, 3, C, C) float32   (kh, kw, in_c, out_c)
    bias:        (C,) float32
    returns:     (B, C, Ho, Wo) float32, Ho = (H - 1) // 2 + ..., same as PyTorch
                 (pad +1 bottom/right, 3x3 conv stride 2).
    """
    B, C, H, W = x_nchw.shape
    x = jnp.transpose(x_nchw, (0, 2, 3, 1))                 # NHWC
    x_pad = jnp.pad(x, ((0, 0), (0, 1), (0, 1), (0, 0)))    # pad H-bottom, W-right
    Hp, Wp = H + 1, W + 1
    Ho = (Hp - 3) // 2 + 1
    Wo = (Wp - 3) // 2 + 1
    M = B * Ho * Wo
    K = 9 * C

    # Glue: fold the 9 stride-2 taps into the contraction dim -> (M, 9C), bf16.
    # TODO(synk): extract the 9 taps in-kernel from an NHWC row slab (overlapping-row DMA)
    # to cut the 9x-duplicated im2col input HBM traffic down to ~1x.
    taps = []
    for kh in range(3):
        for kw in range(3):
            taps.append(
                x_pad[:, kh:kh + 2 * (Ho - 1) + 1:2, kw:kw + 2 * (Wo - 1) + 1:2, :]
            )
    xs = jnp.concatenate(taps, axis=-1).reshape(M, K).astype(jnp.bfloat16)   # (M, 9C)
    wf = weight_hwio.reshape(K, C).astype(jnp.bfloat16)                      # (9C, C)
    b2 = bias.reshape(1, C).astype(jnp.float32)                              # (1, C)

    # M-tile size: multiple of 8 sublanes; 512 rows amortizes per-step overhead and keeps
    # 2x double-buffered (tm, 9C) bf16 + (tm, C) f32 well under 32 MiB scoped VMEM for
    # C up to ~512 (safe on v7x's smaller VMEM; bump for v6e's 128 MiB if desired).
    if tm is None:
        tm = 512 if M >= 512 else _round_up(M, 8)
    Mpad = _round_up(M, tm)
    if Mpad != M:
        xs = jnp.pad(xs, ((0, Mpad - M), (0, 0)))

    out_flat = pl.pallas_call(
        _downsample_matmul_kernel,
        out_shape=jax.ShapeDtypeStruct((Mpad, C), x_nchw.dtype),
        grid_spec=pltpu.PrefetchScalarGridSpec(
            num_scalar_prefetch=0,
            grid=(Mpad // tm,),
            in_specs=[
                pl.BlockSpec((tm, K), lambda i: (i, 0)),   # activation tile
                pl.BlockSpec((K, C), lambda i: (0, 0)),    # folded weight (resident)
                pl.BlockSpec((1, C), lambda i: (0, 0)),    # bias (resident)
            ],
            out_specs=pl.BlockSpec((tm, C), lambda i: (i, 0)),
        ),
        compiler_params=pltpu.CompilerParams(
            dimension_semantics=("parallel",),
            vmem_limit_bytes=32 * 1024 * 1024,
        ),
    )(xs, wf, b2)

    out_nhwc = out_flat[:M].reshape(B, Ho, Wo, C)
    return jnp.transpose(out_nhwc, (0, 3, 1, 2))             # back to NCHW


def init_downsample_params(channel, key):
    """Deterministic init matching conv2d(..., scale=1, mode='fan_avg', uniform)."""
    fan_in = channel * 3 * 3
    fan_out = channel * 3 * 3
    scale = 1.0 / ((fan_in + fan_out) / 2.0)
    bound = math.sqrt(3.0 * scale)
    # weight in HWIO layout: (3, 3, C_in, C_out)
    weight = jax.random.uniform(
        key, (3, 3, channel, channel), dtype=jnp.float32, minval=-bound, maxval=bound
    )
    bias = jnp.zeros((channel,), dtype=jnp.float32)
    return weight, bias


def downsample_reference(x_nchw, weight_hwio, bias):
    """Pure-JAX reference (lax conv, f32) for correctness checking."""
    x = jnp.transpose(x_nchw, (0, 2, 3, 1))  # NHWC
    out = lax.conv_general_dilated(
        x,
        weight_hwio,
        window_strides=(2, 2),
        padding=[(0, 1), (0, 1)],
        dimension_numbers=("NHWC", "HWIO", "NHWC"),
    )
    out = out + bias.reshape(1, 1, 1, -1)
    return jnp.transpose(out, (0, 3, 1, 2))


if __name__ == "__main__":
    key = jax.random.PRNGKey(0)
    k_w, k_x = jax.random.split(key)

    B, C, H, W = 2, 4, 16, 16
    x = jax.random.normal(k_x, (B, C, H, W), dtype=jnp.float32)
    weight, bias = init_downsample_params(C, k_w)

    fwd = jax.jit(functools.partial(downsample_pallas))
    out = jax.block_until_ready(fwd(x, weight, bias))

    ref = downsample_reference(x, weight, bias)
    Ho = (H + 1 - 3) // 2 + 1
    Wo = (W + 1 - 3) // 2 + 1
    assert out.shape == (B, C, Ho, Wo)
    # bf16 MXU inputs with f32 accumulation vs f32 reference -> loose tolerance.
    assert jnp.allclose(out, ref, atol=5e-2, rtol=5e-2), float(
        jnp.max(jnp.abs(out - ref))
    )

    print("KERNEL_OK")
</pallas_src>

<mosaic_0001>
module attributes {stable_mosaic.version = 11 : i64} {
  func.func @_downsample_matmul_kernel(%arg0: i32, %arg1: memref<128x36xbf16, #tpu.memory_space<vmem>>, %arg2: memref<36x4xbf16, #tpu.memory_space<vmem>>, %arg3: memref<1x4xf32, #tpu.memory_space<vmem>>, %arg4: memref<128x4xf32, #tpu.memory_space<vmem>>) attributes {dimension_semantics = [#tpu.dimension_semantics<parallel>], iteration_bounds = array<i64: 1>, scalar_prefetch = 0 : i64, scratch_operands = 0 : i64, tpu.core_type = #tpu.core_type<tc>, window_params = [{transform_indices = @transform_0, window_bounds = array<i64: 128, 36>}, {pipeline_mode = #tpu.pipeline_mode<synchronous>, transform_indices = @transform_1, window_bounds = array<i64: 36, 4>}, {pipeline_mode = #tpu.pipeline_mode<synchronous>, transform_indices = @transform_2, window_bounds = array<i64: 1, 4>}, {transform_indices = @transform_3, window_bounds = array<i64: 128, 4>}]} {
    %c0 = arith.constant 0 : index
    %c0_0 = arith.constant 0 : index
    %0 = vector.load %arg1[%c0, %c0_0] : memref<128x36xbf16, #tpu.memory_space<vmem>>, vector<128x36xbf16>
    %c0_1 = arith.constant 0 : index
    %c0_2 = arith.constant 0 : index
    %1 = vector.load %arg2[%c0_1, %c0_2] : memref<36x4xbf16, #tpu.memory_space<vmem>>, vector<36x4xbf16>
    %cst = arith.constant dense<0.000000e+00> : vector<128x4xf32>
    %2 = tpu.matmul %0, %1, %cst {dimension_numbers = #tpu.dot_dimension_numbers<[1], [0], [0], [1], [0, 0, 1, 1], [], []>} : vector<128x36xbf16>, vector<36x4xbf16>, vector<128x4xf32> -> vector<128x4xf32>
    %c0_3 = arith.constant 0 : index
    %c0_4 = arith.constant 0 : index
    %3 = vector.load %arg3[%c0_3, %c0_4] : memref<1x4xf32, #tpu.memory_space<vmem>>, vector<1x4xf32>
    %4 = vector.broadcast %3 : vector<1x4xf32> to vector<128x4xf32>
    %5 = arith.addf %2, %4 : vector<128x4xf32>
    %c0_5 = arith.constant 0 : index
    %c0_6 = arith.constant 0 : index
    %6 = vector.load %arg4[%c0_5, %c0_6] : memref<128x4xf32, #tpu.memory_space<vmem>>, vector<128x4xf32>
    tpu.vector_store %arg4[%c0_5, %c0_6], %5 {strides = array<i32>} : memref<128x4xf32, #tpu.memory_space<vmem>>, vector<128x4xf32>,
    return
  }
  func.func @transform_0(%arg0: i32) -> (i32, i32) {
    %c0_i32 = arith.constant 0 : i32
    %c0_i32_0 = arith.constant 0 : i32
    return %arg0, %c0_i32 : i32, i32
  }
  func.func @transform_1(%arg0: i32) -> (i32, i32) {
    %c0_i32 = arith.constant 0 : i32
    %c0_i32_0 = arith.constant 0 : i32
    %c0_i32_1 = arith.constant 0 : i32
    return %c0_i32, %c0_i32_0 : i32, i32
  }
  func.func @transform_2(%arg0: i32) -> (i32, i32) {
    %c0_i32 = arith.constant 0 : i32
    %c0_i32_0 = arith.constant 0 : i32
    %c0_i32_1 = arith.constant 0 : i32
    return %c0_i32, %c0_i32_0 : i32, i32
  }
  func.func @transform_3(%arg0: i32) -> (i32, i32) {
    %c0_i32 = arith.constant 0 : i32
    %c0_i32_0 = arith.constant 0 : i32
    return %arg0, %c0_i32 : i32, i32
  }
}

</mosaic_0001>

<bundles_post_ra>
// kernel: downsample_pallas.1
= control target key start
LH: loop header
LB: loop body
LE: loop exit
PB: predicated region body
PF: predicated region fallthrough
CT: control target
= control target key end

     0   :  { %vm123_vm0 = vcmask 1041408   ;;  %vm98_vm1 = vcmask 293888   ;;  %vm224_vm2 = vcmask 31744   ;;  %s445_s1 = inlined_call_operand.vmem [shape: bf16[36,4], index: 1, kind: input, shape index: {}]   ;;  %s446_s0 = inlined_call_operand.vmem [shape: bf16[128,36], index: 0, kind: input, shape index: {}]   ;;  %s447_s2 = inlined_call_operand.vmem [shape: f32[1,4], index: 2, kind: input, shape index: {}]   ;;  %s448_s3 = inlined_call_operand.vmem [shape: f32[128,4], index: 3, kind: output, shape index: {}]  }
   0x1   :  { %v306_v0 = vld [vmem:[%s445_s1 + $0x10] ss:$0 sps:$4 sm:$0x33]   ;;  %v307_v1 = vld [vmem:[%s445_s1 + $0x8] sm:$0xff]   ;;  %v308_v3 = vld [vmem:[%s445_s1] sm:$0xff]  }
   0x2   :  { %304 = vmatprep.subr.msk.bf16.mxu0 %vm123_vm0, %v306_v0  ;;  %305 = vmatprep.subr.msk.bf16.mxu1 %vm123_vm0, %v306_v0  ;;  %v125_v2 = vsel %vm123_vm0, %v306_v0, 0  ;;  %v309_v4 = vld [vmem:[%s446_s0] sm:$0xff]   ;;  %v311_v6 = vld [vmem:[%s446_s0 + $0x8] sm:$0xff]   ;;  %v313_v8 = vld [vmem:[%s446_s0 + $0x10] sm:$0xff]  }
   0x3   :  { %277 = vmatpush3.bf16.msra.mxu0 %v125_v2  ;;  %301 = vmatpush3.bf16.msra.mxu1 %v125_v2  ;;  %v310_v5 = vld [vmem:[%s446_s0 + $0x20] sm:$0xff]   ;;  %v312_v7 = vld [vmem:[%s446_s0 + $0x28] sm:$0xff]   ;;  %v314_v9 = vld [vmem:[%s446_s0 + $0x30] sm:$0xff]  }
   0x4   :  { %278 = vmatprep.subr.bf16.mxu0 %v307_v1  ;;  %299 = vmatprep.subr.bf16.mxu1 %v307_v1  ;;  %v315_v10 = vld [vmem:[%s446_s0 + $0x18] sm:$0xff]   ;;  %v245_v12 = vld [vmem:[%s447_s2] ss:$0 sm:$0xff] }
   0x5   :  { %282 = vmatprep.mubr.msk.bf16.mxu0 %vm98_vm1, %v309_v4  ;;  %290 = vmatprep.mubr.msk.bf16.mxu1 %vm98_vm1, %v310_v5  ;;  %v316_v11 = vld [vmem:[%s446_s0 + $0x38] sm:$0xff]  }
   0x7   :  { %279 = vmatpush3.bf16.msra.mxu0 %v307_v1  ;;  %302 = vmatpush3.bf16.msra.mxu1 %v307_v1 }
   0x8   :  { %280 = vmatprep.subr.bf16.mxu0 %v308_v3  ;;  %300 = vmatprep.subr.bf16.mxu1 %v308_v3 }
   0xb   :  { %281 = vmatpush3.bf16.msra.mxu0 %v308_v3  ;;  %303 = vmatpush3.bf16.msra.mxu1 %v308_v3 }
   0xe   :  { %283 = vmatmul.mubr.msk.bf16.vlgmr.msra.gmra.mxu0 %vm98_vm1, %v311_v6  ;;  %291 = vmatmul.mubr.msk.bf16.vlgmr.msra.gmra.mxu1 %vm98_vm1, %v312_v7 }
   0xf   :  { %286 = vmatprep.mubr.msk.bf16.mxu0 %vm98_vm1, %v313_v8  ;;  %294 = vmatprep.mubr.msk.bf16.mxu1 %vm98_vm1, %v314_v9 }
  0x16   :  { %287 = vmatmul.mubr.msk.bf16.gmra.mxu0 %vm98_vm1, %v315_v10  ;;  %295 = vmatmul.mubr.msk.bf16.gmra.mxu1 %vm98_vm1, %v316_v11 }
  0xce   :  { %v284_v13 = vpop.f32.mrf.mxu0  ;;  %v292_v14 = vpop.f32.mrf.mxu1 }
  0xcf   :  { %v170_v15 = vadd.f32 %v284_v13, %v245_v12  ;;  %v202_v16 = vadd.f32 %v292_v14, %v245_v12 }
  0xd0   :  { %v161_v17 = vpop.f32.mrf.mxu0  ;;  %v193_v18 = vpop.f32.mrf.mxu1 }
  0xd1   :  { %227 = vst.msk [vmem:[%s448_s3 + $0x10] sm:$0xff] %vm224_vm2, %v170_v15  ;;  %235 = vst.msk [vmem:[%s448_s3 + $0x50] sm:$0xff] %vm224_vm2, %v202_v16  ;;  %v162_v19 = vadd.f32 %v245_v12, %v161_v17  ;;  %v194_v20 = vadd.f32 %v245_v12, %v193_v18 }
  0xd2   :  { %v285_v21 = vpop.f32.mrf.mxu0  ;;  %v293_v22 = vpop.f32.mrf.mxu1 }
  0xd3   :  { %225 = vst.msk [vmem:[%s448_s3] sm:$0xff] %vm224_vm2, %v162_v19  ;;  %233 = vst.msk [vmem:[%s448_s3 + $0x40] sm:$0xff] %vm224_vm2, %v194_v20  ;;  %v173_v23 = vadd.f32 %v285_v21, %v245_v12  ;;  %v205_v24 = vadd.f32 %v293_v22, %v245_v12 }
  0xd4   :  { %v164_v25 = vpop.f32.mrf.mxu0  ;;  %v196_v26 = vpop.f32.mrf.mxu1 }
  0xd5   :  { %228 = vst.msk [vmem:[%s448_s3 + $0x18] sm:$0xff] %vm224_vm2, %v173_v23  ;;  %236 = vst.msk [vmem:[%s448_s3 + $0x58] sm:$0xff] %vm224_vm2, %v205_v24  ;;  %v165_v27 = vadd.f32 %v245_v12, %v164_v25  ;;  %v197_v28 = vadd.f32 %v245_v12, %v196_v26 }
  0xd6   :  { %v288_v29 = vpop.f32.mrf.mxu0  ;;  %v296_v30 = vpop.f32.mrf.mxu1 }
  0xd7   :  { %226 = vst.msk [vmem:[%s448_s3 + $0x8] sm:$0xff] %vm224_vm2, %v165_v27  ;;  %234 = vst.msk [vmem:[%s448_s3 + $0x48] sm:$0xff] %vm224_vm2, %v197_v28  ;;  %v186_v31 = vadd.f32 %v288_v29, %v245_v12  ;;  %v218_v32 = vadd.f32 %v296_v30, %v245_v12 }
  0xd8   :  { %v177_v33 = vpop.f32.mrf.mxu0  ;;  %v209_v34 = vpop.f32.mrf.mxu1 }
  0xd9   :  { %231 = vst.msk [vmem:[%s448_s3 + $0x30] sm:$0xff] %vm224_vm2, %v186_v31  ;;  %239 = vst.msk [vmem:[%s448_s3 + $0x70] sm:$0xff] %vm224_vm2, %v218_v32  ;;  %v178_v35 = vadd.f32 %v245_v12, %v177_v33  ;;  %v210_v36 = vadd.f32 %v245_v12, %v209_v34 }
  0xda   :  { %v289_v37 = vpop.f32.mrf.mxu0  ;;  %v297_v38 = vpop.f32.mrf.mxu1 }
  0xdb   :  { %229 = vst.msk [vmem:[%s448_s3 + $0x20] sm:$0xff] %vm224_vm2, %v178_v35  ;;  %237 = vst.msk [vmem:[%s448_s3 + $0x60] sm:$0xff] %vm224_vm2, %v210_v36  ;;  %v189_v39 = vadd.f32 %v289_v37, %v245_v12  ;;  %v221_v40 = vadd.f32 %v297_v38, %v245_v12 }
  0xdc   :  { %v180_v41 = vpop.f32.mrf.mxu0  ;;  %v212_v42 = vpop.f32.mrf.mxu1 }
  0xdd   :  { %232 = vst.msk [vmem:[%s448_s3 + $0x38] sm:$0xff] %vm224_vm2, %v189_v39  ;;  %240 = vst.msk [vmem:[%s448_s3 + $0x78] sm:$0xff] %vm224_vm2, %v221_v40  ;;  %v181_v43 = vadd.f32 %v245_v12, %v180_v41  ;;  %v213_v44 = vadd.f32 %v245_v12, %v212_v42 }
  0xdf   :  { %230 = vst.msk [vmem:[%s448_s3 + $0x28] sm:$0xff] %vm224_vm2, %v181_v43  ;;  %238 = vst.msk [vmem:[%s448_s3 + $0x68] sm:$0xff] %vm224_vm2, %v213_v44 }

</bundles_post_ra>
